<compile_context>
chip_gen: v7x
topology: tpu7x:2x2x1
jax: 0.10.0
libtpu: 0.0.40
codegen_flags: <defaults>
</compile_context>

<pallas_src>
import functools
import math

import jax
import jax.numpy as jnp
from jax.experimental import pallas as pl
from jax.experimental.pallas import tpu as pltpu

EMBED_DIM = 64
NUM_HEADS = 4
HEAD_DIM = EMBED_DIM // NUM_HEADS


def _mha_kernel(n_batch, q_ref, k_ref, v_ref, w_qkv_ref, b_qkv_ref, wo_ref, bo_ref, o_ref):
    E, H, D = EMBED_DIM, NUM_HEADS, HEAD_DIM
    NL = q_ref.shape[0]   # L * N  (rows are (l, n), seq-major)
    NS = k_ref.shape[0]   # S * N

    # bf16 MXU operands (weights are already stored bf16); accumulate in f32.
    q2 = q_ref[...].astype(jnp.bfloat16)
    k2 = k_ref[...].astype(jnp.bfloat16)
    v2 = v_ref[...].astype(jnp.bfloat16)

    # Fused lane-dense projections: one (·,64)@(64,64) matmul per source, one lane-dense
    # (1,64) bias add per projection.  The 1/sqrt(D) scale is folded into the Q slab.
    qf = jnp.dot(q2, w_qkv_ref[0], preferred_element_type=jnp.float32) + b_qkv_ref[0]
    kf = jnp.dot(k2, w_qkv_ref[1], preferred_element_type=jnp.float32) + b_qkv_ref[1]
    vf = jnp.dot(v2, w_qkv_ref[2], preferred_element_type=jnp.float32) + b_qkv_ref[2]

    qf = qf.astype(jnp.bfloat16)
    kf = kf.astype(jnp.bfloat16)
    vf = vf.astype(jnp.bfloat16)

    # Batch mask for the contiguous seq-major flattening: row r is batch r % N, column c is
    # batch c % N.  Built once per call (hoisted out of the head loop); skipped when N == 1.
    if n_batch > 1:
        row_b = jax.lax.broadcasted_iota(jnp.int32, (NL, NS), 0) % n_batch
        col_b = jax.lax.broadcasted_iota(jnp.int32, (NL, NS), 1) % n_batch
        mask_bias = jnp.where(row_b == col_b, jnp.float32(0.0), jnp.float32(-1e30))
    else:
        mask_bias = None

    head_outs = []
    for h in range(H):  # static unroll over 4 heads; static lane slices at offsets h*16
        sl = slice(h * D, (h + 1) * D)
        qh = qf[:, sl]
        kh = kf[:, sl]
        vh = vf[:, sl]

        # Scores: contract the head dim of q and k (q @ k^T) without an explicit transpose.
        s = jax.lax.dot_general(qh, kh, (((1,), (1,)), ((), ())),
                                preferred_element_type=jnp.float32)      # (NL, NS) f32
        if mask_bias is not None:
            s = s + mask_bias
        s = s - jnp.max(s, axis=-1, keepdims=True)
        p = jnp.exp(s)
        p = p * pl.reciprocal(jnp.sum(p, axis=-1, keepdims=True), approx=True)

        head_outs.append(jnp.dot(p.astype(jnp.bfloat16), vh,
                                 preferred_element_type=jnp.float32))    # (NL, D)

    # Lane-place the 4 head outputs into one (NL, 64) slab -> single K=64 output projection.
    attn = jnp.concatenate(head_outs, axis=-1).astype(jnp.bfloat16)      # (NL, E)
    out = jnp.dot(attn, wo_ref[...], preferred_element_type=jnp.float32) + bo_ref[...]

    # NOTE: E=64 < 128 lanes -> masked store; acceptable while NL stays tiny (see review).
    o_ref[...] = out.astype(o_ref.dtype)


def prepare_params(params):
    """One-time packing: pre-transpose weights, fold the softmax scale, cast to bf16."""
    E, D = EMBED_DIM, HEAD_DIM
    w_in = params["in_proj_weight"]        # (3E, E)  PyTorch layout (out, in)
    b_in = params["in_proj_bias"]          # (3E,)
    w_out = params["out_proj_weight"]      # (E, E)
    b_out = params["out_proj_bias"]        # (E,)

    scale = 1.0 / math.sqrt(D)
    # Three (E, E) slabs such that x @ w_qkv[p] == x @ W_p.T; 1/sqrt(D) folded into Q.
    w_q = w_in[:E].T * scale
    w_k = w_in[E:2 * E].T
    w_v = w_in[2 * E:].T
    w_qkv = jnp.stack([w_q, w_k, w_v]).astype(jnp.bfloat16)              # (3, E, E) bf16

    b_q = b_in[:E] * scale
    b_qkv = jnp.stack([b_q, b_in[E:2 * E], b_in[2 * E:]]).reshape(3, 1, E)

    return {
        "w_qkv": w_qkv,
        "b_qkv": jnp.asarray(b_qkv, jnp.float32),                        # (3, 1, E) f32
        "wo": jnp.asarray(w_out.T, jnp.bfloat16),                        # (E, E) bf16
        "bo": jnp.asarray(b_out.reshape(1, E), jnp.float32),             # (1, E) f32
    }


def multihead_attention(query, key, value, prepared):
    """query/key/value: (L, N, E) / (S, N, E) / (S, N, E), seq-first like PyTorch."""
    L, N, E = query.shape
    S = key.shape[0]

    # Contiguous flatten (bitcast reshape) — no wrapper transposes.
    q2 = query.reshape(L * N, E)
    k2 = key.reshape(S * N, E)
    v2 = value.reshape(S * N, E)

    kernel = functools.partial(_mha_kernel, N)
    vmem = pltpu.MemorySpace.VMEM

    out2 = pl.pallas_call(
        kernel,
        out_shape=jax.ShapeDtypeStruct((L * N, E), query.dtype),
        in_specs=[pl.BlockSpec(memory_space=vmem)] * 7,
        out_specs=pl.BlockSpec(memory_space=vmem),
    )(q2, k2, v2,
      prepared["w_qkv"], prepared["b_qkv"], prepared["wo"], prepared["bo"])

    return out2.reshape(L, N, E)   # rows are (l, n) -> direct reshape back to seq-first


def _reference_mha(query, key, value, params):
    """Pure-JAX f32 reference matching torch.nn.MultiheadAttention forward (raw params)."""
    L, N, E = query.shape
    S = key.shape[0]
    H, D = NUM_HEADS, HEAD_DIM
    w_in = params["in_proj_weight"]
    b_in = params["in_proj_bias"]
    wq, wk, wv = w_in[:E], w_in[E:2 * E], w_in[2 * E:]
    bq, bk, bv = b_in[:E], b_in[E:2 * E], b_in[2 * E:]

    q = jnp.einsum("lne,oe->lno", query, wq) + bq
    k = jnp.einsum("sne,oe->sno", key, wk) + bk
    v = jnp.einsum("sne,oe->sno", value, wv) + bv

    q = q.reshape(L, N, H, D).transpose(1, 2, 0, 3) / math.sqrt(D)  # (N,H,L,D)
    k = k.reshape(S, N, H, D).transpose(1, 2, 0, 3)
    v = v.reshape(S, N, H, D).transpose(1, 2, 0, 3)

    scores = jnp.einsum("nhld,nhsd->nhls", q, k)
    p = jax.nn.softmax(scores, axis=-1)
    o = jnp.einsum("nhls,nhsd->nhld", p, v)            # (N,H,L,D)
    o = o.transpose(2, 0, 1, 3).reshape(L, N, E)
    out = jnp.einsum("lne,oe->lno", o, params["out_proj_weight"]) + params["out_proj_bias"]
    return out


def init_params(key):
    k1, k2, k3, k4 = jax.random.split(key, 4)
    E = EMBED_DIM
    lim_in = math.sqrt(6.0 / (E + 3 * E))
    lim_out = math.sqrt(6.0 / (E + E))
    return {
        "in_proj_weight": jax.random.uniform(k1, (3 * E, E), jnp.float32, -lim_in, lim_in),
        "in_proj_bias": 0.1 * jax.random.normal(k3, (3 * E,), jnp.float32),
        "out_proj_weight": jax.random.uniform(k2, (E, E), jnp.float32, -lim_out, lim_out),
        "out_proj_bias": 0.1 * jax.random.normal(k4, (E,), jnp.float32),
    }


if __name__ == "__main__":
    key = jax.random.PRNGKey(0)
    kp, kq, kk, kv = jax.random.split(key, 4)

    L, S, N, E = 8, 8, 2, EMBED_DIM
    query = jax.random.normal(kq, (L, N, E), jnp.float32)
    key_in = jax.random.normal(kk, (S, N, E), jnp.float32)
    value = jax.random.normal(kv, (S, N, E), jnp.float32)

    params = init_params(kp)
    prepared = prepare_params(params)   # one-time weight packing (not per-call)

    out = jax.block_until_ready(multihead_attention(query, key_in, value, prepared))
    ref = jax.block_until_ready(_reference_mha(query, key_in, value, params))

    assert out.shape == (L, N, E)
    # tolerance accounts for bf16 MXU operands + the approx (EUP) softmax reciprocal
    assert jnp.allclose(out, ref, atol=2e-2, rtol=2e-2), "mismatch vs reference"
    print("KERNEL_OK")
</pallas_src>

<mosaic_0001>
module attributes {stable_mosaic.version = 11 : i64} {
  func.func @_mha_kernel(%arg0: memref<16x64xf32, #tpu.memory_space<vmem>>, %arg1: memref<16x64xf32, #tpu.memory_space<vmem>>, %arg2: memref<16x64xf32, #tpu.memory_space<vmem>>, %arg3: memref<3x64x64xbf16, #tpu.memory_space<vmem>>, %arg4: memref<3x1x64xf32, #tpu.memory_space<vmem>>, %arg5: memref<64x64xbf16, #tpu.memory_space<vmem>>, %arg6: memref<1x64xf32, #tpu.memory_space<vmem>>, %arg7: memref<16x64xf32, #tpu.memory_space<vmem>>) attributes {dimension_semantics = [], scalar_prefetch = 0 : i64, scratch_operands = 0 : i64, tpu.core_type = #tpu.core_type<tc>} {
    %c0 = arith.constant 0 : index
    %c0_0 = arith.constant 0 : index
    %0 = vector.load %arg0[%c0, %c0_0] : memref<16x64xf32, #tpu.memory_space<vmem>>, vector<16x64xf32>
    %1 = arith.truncf %0 : vector<16x64xf32> to vector<16x64xbf16>
    %c0_1 = arith.constant 0 : index
    %c0_2 = arith.constant 0 : index
    %2 = vector.load %arg1[%c0_1, %c0_2] : memref<16x64xf32, #tpu.memory_space<vmem>>, vector<16x64xf32>
    %3 = arith.truncf %2 : vector<16x64xf32> to vector<16x64xbf16>
    %c0_3 = arith.constant 0 : index
    %c0_4 = arith.constant 0 : index
    %4 = vector.load %arg2[%c0_3, %c0_4] : memref<16x64xf32, #tpu.memory_space<vmem>>, vector<16x64xf32>
    %5 = arith.truncf %4 : vector<16x64xf32> to vector<16x64xbf16>
    %c0_5 = arith.constant 0 : index
    %c0_6 = arith.constant 0 : index
    %c0_7 = arith.constant 0 : index
    %6 = vector.load %arg3[%c0_5, %c0_6, %c0_7] : memref<3x64x64xbf16, #tpu.memory_space<vmem>>, vector<1x64x64xbf16>
    %7 = vector.shape_cast %6 : vector<1x64x64xbf16> to vector<64x64xbf16>
    %cst = arith.constant dense<0.000000e+00> : vector<16x64xf32>
    %8 = tpu.matmul %1, %7, %cst {dimension_numbers = #tpu.dot_dimension_numbers<[1], [0], [0], [1], [0, 0, 1, 1], [], []>} : vector<16x64xbf16>, vector<64x64xbf16>, vector<16x64xf32> -> vector<16x64xf32>
    %c0_8 = arith.constant 0 : index
    %c0_9 = arith.constant 0 : index
    %c0_10 = arith.constant 0 : index
    %9 = vector.load %arg4[%c0_8, %c0_9, %c0_10] : memref<3x1x64xf32, #tpu.memory_space<vmem>>, vector<1x1x64xf32>
    %10 = vector.shape_cast %9 : vector<1x1x64xf32> to vector<1x64xf32>
    %11 = vector.broadcast %10 : vector<1x64xf32> to vector<16x64xf32>
    %12 = arith.addf %8, %11 : vector<16x64xf32>
    %c1 = arith.constant 1 : index
    %c0_11 = arith.constant 0 : index
    %c0_12 = arith.constant 0 : index
    %13 = vector.load %arg3[%c1, %c0_11, %c0_12] : memref<3x64x64xbf16, #tpu.memory_space<vmem>>, vector<1x64x64xbf16>
    %14 = vector.shape_cast %13 : vector<1x64x64xbf16> to vector<64x64xbf16>
    %cst_13 = arith.constant dense<0.000000e+00> : vector<16x64xf32>
    %15 = tpu.matmul %3, %14, %cst_13 {dimension_numbers = #tpu.dot_dimension_numbers<[1], [0], [0], [1], [0, 0, 1, 1], [], []>} : vector<16x64xbf16>, vector<64x64xbf16>, vector<16x64xf32> -> vector<16x64xf32>
    %c1_14 = arith.constant 1 : index
    %c0_15 = arith.constant 0 : index
    %c0_16 = arith.constant 0 : index
    %16 = vector.load %arg4[%c1_14, %c0_15, %c0_16] : memref<3x1x64xf32, #tpu.memory_space<vmem>>, vector<1x1x64xf32>
    %17 = vector.shape_cast %16 : vector<1x1x64xf32> to vector<1x64xf32>
    %18 = vector.broadcast %17 : vector<1x64xf32> to vector<16x64xf32>
    %19 = arith.addf %15, %18 : vector<16x64xf32>
    %c2 = arith.constant 2 : index
    %c0_17 = arith.constant 0 : index
    %c0_18 = arith.constant 0 : index
    %20 = vector.load %arg3[%c2, %c0_17, %c0_18] : memref<3x64x64xbf16, #tpu.memory_space<vmem>>, vector<1x64x64xbf16>
    %21 = vector.shape_cast %20 : vector<1x64x64xbf16> to vector<64x64xbf16>
    %cst_19 = arith.constant dense<0.000000e+00> : vector<16x64xf32>
    %22 = tpu.matmul %5, %21, %cst_19 {dimension_numbers = #tpu.dot_dimension_numbers<[1], [0], [0], [1], [0, 0, 1, 1], [], []>} : vector<16x64xbf16>, vector<64x64xbf16>, vector<16x64xf32> -> vector<16x64xf32>
    %c2_20 = arith.constant 2 : index
    %c0_21 = arith.constant 0 : index
    %c0_22 = arith.constant 0 : index
    %23 = vector.load %arg4[%c2_20, %c0_21, %c0_22] : memref<3x1x64xf32, #tpu.memory_space<vmem>>, vector<1x1x64xf32>
    %24 = vector.shape_cast %23 : vector<1x1x64xf32> to vector<1x64xf32>
    %25 = vector.broadcast %24 : vector<1x64xf32> to vector<16x64xf32>
    %26 = arith.addf %22, %25 : vector<16x64xf32>
    %27 = arith.truncf %12 : vector<16x64xf32> to vector<16x64xbf16>
    %28 = arith.truncf %19 : vector<16x64xf32> to vector<16x64xbf16>
    %29 = arith.truncf %26 : vector<16x64xf32> to vector<16x64xbf16>
    %30 = tpu.iota {dimensions = array<i32: 0>} : vector<16x16xi32>
    %c2_i32 = arith.constant 2 : i32
    %c0_i32 = arith.constant 0 : i32
    %31 = arith.cmpi eq, %c2_i32, %c0_i32 : i32
    %c1_i32 = arith.constant 1 : i32
    %32 = arith.select %31, %c1_i32, %c2_i32 : i32
    %33 = vector.broadcast %32 : i32 to vector<16x16xi32>
    %34 = arith.remsi %30, %33 : vector<16x16xi32>
    %c0_i32_23 = arith.constant 0 : i32
    %35 = vector.broadcast %c0_i32_23 : i32 to vector<16x16xi32>
    %36 = arith.cmpi ne, %34, %35 : vector<16x16xi32>
    %c0_i32_24 = arith.constant 0 : i32
    %37 = vector.broadcast %c0_i32_24 : i32 to vector<16x16xi32>
    %38 = arith.cmpi slt, %34, %37 : vector<16x16xi32>
    %c0_i32_25 = arith.constant 0 : i32
    %39 = arith.cmpi slt, %32, %c0_i32_25 : i32
    %40 = vector.broadcast %39 : i1 to vector<16x16xi1>
    %41 = vector.broadcast %40 : vector<16x16xi1> to vector<16x16xi1>
    %42 = arith.xori %38, %41 : vector<16x16xi1>
    %43 = arith.andi %42, %36 : vector<16x16xi1>
    %44 = vector.broadcast %32 : i32 to vector<16x16xi32>
    %45 = arith.addi %34, %44 : vector<16x16xi32>
    %46 = arith.select %43, %45, %34 : vector<16x16xi1>, vector<16x16xi32>
    %47 = tpu.iota {dimensions = array<i32: 1>} : vector<16x16xi32>
    %c2_i32_26 = arith.constant 2 : i32
    %c0_i32_27 = arith.constant 0 : i32
    %48 = arith.cmpi eq, %c2_i32_26, %c0_i32_27 : i32
    %c1_i32_28 = arith.constant 1 : i32
    %49 = arith.select %48, %c1_i32_28, %c2_i32_26 : i32
    %50 = vector.broadcast %49 : i32 to vector<16x16xi32>
    %51 = arith.remsi %47, %50 : vector<16x16xi32>
    %c0_i32_29 = arith.constant 0 : i32
    %52 = vector.broadcast %c0_i32_29 : i32 to vector<16x16xi32>
    %53 = arith.cmpi ne, %51, %52 : vector<16x16xi32>
    %c0_i32_30 = arith.constant 0 : i32
    %54 = vector.broadcast %c0_i32_30 : i32 to vector<16x16xi32>
    %55 = arith.cmpi slt, %51, %54 : vector<16x16xi32>
    %c0_i32_31 = arith.constant 0 : i32
    %56 = arith.cmpi slt, %49, %c0_i32_31 : i32
    %57 = vector.broadcast %56 : i1 to vector<16x16xi1>
    %58 = vector.broadcast %57 : vector<16x16xi1> to vector<16x16xi1>
    %59 = arith.xori %55, %58 : vector<16x16xi1>
    %60 = arith.andi %59, %53 : vector<16x16xi1>
    %61 = vector.broadcast %49 : i32 to vector<16x16xi32>
    %62 = arith.addi %51, %61 : vector<16x16xi32>
    %63 = arith.select %60, %62, %51 : vector<16x16xi1>, vector<16x16xi32>
    %64 = arith.cmpi eq, %46, %63 : vector<16x16xi32>
    %cst_32 = arith.constant 0.000000e+00 : f32
    %cst_33 = arith.constant -1.000000e+30 : f32
    %65 = vector.broadcast %cst_32 : f32 to vector<16x16xf32>
    %66 = vector.broadcast %cst_33 : f32 to vector<16x16xf32>
    %67 = arith.select %64, %65, %66 : vector<16x16xi1>, vector<16x16xf32>
    %68 = vector.extract_strided_slice %27 {offsets = [0, 0], sizes = [16, 16], strides = [1, 1]} : vector<16x64xbf16> to vector<16x16xbf16>
    %69 = vector.extract_strided_slice %28 {offsets = [0, 0], sizes = [16, 16], strides = [1, 1]} : vector<16x64xbf16> to vector<16x16xbf16>
    %70 = vector.extract_strided_slice %29 {offsets = [0, 0], sizes = [16, 16], strides = [1, 1]} : vector<16x64xbf16> to vector<16x16xbf16>
    %cst_34 = arith.constant dense<0.000000e+00> : vector<16x16xf32>
    %71 = tpu.matmul %68, %69, %cst_34 {dimension_numbers = #tpu.dot_dimension_numbers<[1], [1], [0], [0], [0, 0, 1, 0], [], []>} : vector<16x16xbf16>, vector<16x16xbf16>, vector<16x16xf32> -> vector<16x16xf32>
    %72 = arith.addf %71, %67 : vector<16x16xf32>
    %cst_35 = arith.constant dense<0xFF800000> : vector<16xf32>
    %73 = vector.multi_reduction <maximumf>, %72, %cst_35 [1] : vector<16x16xf32> to vector<16xf32>
    %74 = vector.shape_cast %73 : vector<16xf32> to vector<16x1xf32>
    %75 = vector.broadcast %74 : vector<16x1xf32> to vector<16x16xf32>
    %76 = arith.subf %72, %75 : vector<16x16xf32>
    %77 = math.exp %76 : vector<16x16xf32>
    %cst_36 = arith.constant dense<0.000000e+00> : vector<16xf32>
    %78 = vector.multi_reduction <add>, %77, %cst_36 [1] : vector<16x16xf32> to vector<16xf32>
    %79 = vector.shape_cast %78 : vector<16xf32> to vector<16x1xf32>
    %80 = tpu.reciprocal %79 {approx = true} : vector<16x1xf32> -> vector<16x1xf32>
    %81 = vector.broadcast %80 : vector<16x1xf32> to vector<16x16xf32>
    %82 = arith.mulf %77, %81 : vector<16x16xf32>
    %83 = arith.truncf %82 : vector<16x16xf32> to vector<16x16xbf16>
    %cst_37 = arith.constant dense<0.000000e+00> : vector<16x16xf32>
    %84 = tpu.matmul %83, %70, %cst_37 {dimension_numbers = #tpu.dot_dimension_numbers<[1], [0], [0], [1], [0, 0, 1, 1], [], []>} : vector<16x16xbf16>, vector<16x16xbf16>, vector<16x16xf32> -> vector<16x16xf32>
    %85 = vector.extract_strided_slice %27 {offsets = [0, 16], sizes = [16, 16], strides = [1, 1]} : vector<16x64xbf16> to vector<16x16xbf16>
    %86 = vector.extract_strided_slice %28 {offsets = [0, 16], sizes = [16, 16], strides = [1, 1]} : vector<16x64xbf16> to vector<16x16xbf16>
    %87 = vector.extract_strided_slice %29 {offsets = [0, 16], sizes = [16, 16], strides = [1, 1]} : vector<16x64xbf16> to vector<16x16xbf16>
    %cst_38 = arith.constant dense<0.000000e+00> : vector<16x16xf32>
    %88 = tpu.matmul %85, %86, %cst_38 {dimension_numbers = #tpu.dot_dimension_numbers<[1], [1], [0], [0], [0, 0, 1, 0], [], []>} : vector<16x16xbf16>, vector<16x16xbf16>, vector<16x16xf32> -> vector<16x16xf32>
    %89 = arith.addf %88, %67 : vector<16x16xf32>
    %cst_39 = arith.constant dense<0xFF800000> : vector<16xf32>
    %90 = vector.multi_reduction <maximumf>, %89, %cst_39 [1] : vector<16x16xf32> to vector<16xf32>
    %91 = vector.shape_cast %90 : vector<16xf32> to vector<16x1xf32>
    %92 = vector.broadcast %91 : vector<16x1xf32> to vector<16x16xf32>
    %93 = arith.subf %89, %92 : vector<16x16xf32>
    %94 = math.exp %93 : vector<16x16xf32>
    %cst_40 = arith.constant dense<0.000000e+00> : vector<16xf32>
    %95 = vector.multi_reduction <add>, %94, %cst_40 [1] : vector<16x16xf32> to vector<16xf32>
    %96 = vector.shape_cast %95 : vector<16xf32> to vector<16x1xf32>
    %97 = tpu.reciprocal %96 {approx = true} : vector<16x1xf32> -> vector<16x1xf32>
    %98 = vector.broadcast %97 : vector<16x1xf32> to vector<16x16xf32>
    %99 = arith.mulf %94, %98 : vector<16x16xf32>
    %100 = arith.truncf %99 : vector<16x16xf32> to vector<16x16xbf16>
    %cst_41 = arith.constant dense<0.000000e+00> : vector<16x16xf32>
    %101 = tpu.matmul %100, %87, %cst_41 {dimension_numbers = #tpu.dot_dimension_numbers<[1], [0], [0], [1], [0, 0, 1, 1], [], []>} : vector<16x16xbf16>, vector<16x16xbf16>, vector<16x16xf32> -> vector<16x16xf32>
    %102 = vector.extract_strided_slice %27 {offsets = [0, 32], sizes = [16, 16], strides = [1, 1]} : vector<16x64xbf16> to vector<16x16xbf16>
    %103 = vector.extract_strided_slice %28 {offsets = [0, 32], sizes = [16, 16], strides = [1, 1]} : vector<16x64xbf16> to vector<16x16xbf16>
    %104 = vector.extract_strided_slice %29 {offsets = [0, 32], sizes = [16, 16], strides = [1, 1]} : vector<16x64xbf16> to vector<16x16xbf16>
    %cst_42 = arith.constant dense<0.000000e+00> : vector<16x16xf32>
    %105 = tpu.matmul %102, %103, %cst_42 {dimension_numbers = #tpu.dot_dimension_numbers<[1], [1], [0], [0], [0, 0, 1, 0], [], []>} : vector<16x16xbf16>, vector<16x16xbf16>, vector<16x16xf32> -> vector<16x16xf32>
    %106 = arith.addf %105, %67 : vector<16x16xf32>
    %cst_43 = arith.constant dense<0xFF800000> : vector<16xf32>
    %107 = vector.multi_reduction <maximumf>, %106, %cst_43 [1] : vector<16x16xf32> to vector<16xf32>
    %108 = vector.shape_cast %107 : vector<16xf32> to vector<16x1xf32>
    %109 = vector.broadcast %108 : vector<16x1xf32> to vector<16x16xf32>
    %110 = arith.subf %106, %109 : vector<16x16xf32>
    %111 = math.exp %110 : vector<16x16xf32>
    %cst_44 = arith.constant dense<0.000000e+00> : vector<16xf32>
    %112 = vector.multi_reduction <add>, %111, %cst_44 [1] : vector<16x16xf32> to vector<16xf32>
    %113 = vector.shape_cast %112 : vector<16xf32> to vector<16x1xf32>
    %114 = tpu.reciprocal %113 {approx = true} : vector<16x1xf32> -> vector<16x1xf32>
    %115 = vector.broadcast %114 : vector<16x1xf32> to vector<16x16xf32>
    %116 = arith.mulf %111, %115 : vector<16x16xf32>
    %117 = arith.truncf %116 : vector<16x16xf32> to vector<16x16xbf16>
    %cst_45 = arith.constant dense<0.000000e+00> : vector<16x16xf32>
    %118 = tpu.matmul %117, %104, %cst_45 {dimension_numbers = #tpu.dot_dimension_numbers<[1], [0], [0], [1], [0, 0, 1, 1], [], []>} : vector<16x16xbf16>, vector<16x16xbf16>, vector<16x16xf32> -> vector<16x16xf32>
    %119 = vector.extract_strided_slice %27 {offsets = [0, 48], sizes = [16, 16], strides = [1, 1]} : vector<16x64xbf16> to vector<16x16xbf16>
    %120 = vector.extract_strided_slice %28 {offsets = [0, 48], sizes = [16, 16], strides = [1, 1]} : vector<16x64xbf16> to vector<16x16xbf16>
    %121 = vector.extract_strided_slice %29 {offsets = [0, 48], sizes = [16, 16], strides = [1, 1]} : vector<16x64xbf16> to vector<16x16xbf16>
    %cst_46 = arith.constant dense<0.000000e+00> : vector<16x16xf32>
    %122 = tpu.matmul %119, %120, %cst_46 {dimension_numbers = #tpu.dot_dimension_numbers<[1], [1], [0], [0], [0, 0, 1, 0], [], []>} : vector<16x16xbf16>, vector<16x16xbf16>, vector<16x16xf32> -> vector<16x16xf32>
    %123 = arith.addf %122, %67 : vector<16x16xf32>
    %cst_47 = arith.constant dense<0xFF800000> : vector<16xf32>
    %124 = vector.multi_reduction <maximumf>, %123, %cst_47 [1] : vector<16x16xf32> to vector<16xf32>
    %125 = vector.shape_cast %124 : vector<16xf32> to vector<16x1xf32>
    %126 = vector.broadcast %125 : vector<16x1xf32> to vector<16x16xf32>
    %127 = arith.subf %123, %126 : vector<16x16xf32>
    %128 = math.exp %127 : vector<16x16xf32>
    %cst_48 = arith.constant dense<0.000000e+00> : vector<16xf32>
    %129 = vector.multi_reduction <add>, %128, %cst_48 [1] : vector<16x16xf32> to vector<16xf32>
    %130 = vector.shape_cast %129 : vector<16xf32> to vector<16x1xf32>
    %131 = tpu.reciprocal %130 {approx = true} : vector<16x1xf32> -> vector<16x1xf32>
    %132 = vector.broadcast %131 : vector<16x1xf32> to vector<16x16xf32>
    %133 = arith.mulf %128, %132 : vector<16x16xf32>
    %134 = arith.truncf %133 : vector<16x16xf32> to vector<16x16xbf16>
    %cst_49 = arith.constant dense<0.000000e+00> : vector<16x16xf32>
    %135 = tpu.matmul %134, %121, %cst_49 {dimension_numbers = #tpu.dot_dimension_numbers<[1], [0], [0], [1], [0, 0, 1, 1], [], []>} : vector<16x16xbf16>, vector<16x16xbf16>, vector<16x16xf32> -> vector<16x16xf32>
    %136 = tpu.concatenate %84, %101, %118, %135 in 1 : vector<16x16xf32>, vector<16x16xf32>, vector<16x16xf32>, vector<16x16xf32> -> vector<16x64xf32>
    %137 = arith.truncf %136 : vector<16x64xf32> to vector<16x64xbf16>
    %c0_50 = arith.constant 0 : index
    %c0_51 = arith.constant 0 : index
    %138 = vector.load %arg5[%c0_50, %c0_51] : memref<64x64xbf16, #tpu.memory_space<vmem>>, vector<64x64xbf16>
    %cst_52 = arith.constant dense<0.000000e+00> : vector<16x64xf32>
    %139 = tpu.matmul %137, %138, %cst_52 {dimension_numbers = #tpu.dot_dimension_numbers<[1], [0], [0], [1], [0, 0, 1, 1], [], []>} : vector<16x64xbf16>, vector<64x64xbf16>, vector<16x64xf32> -> vector<16x64xf32>
    %c0_53 = arith.constant 0 : index
    %c0_54 = arith.constant 0 : index
    %140 = vector.load %arg6[%c0_53, %c0_54] : memref<1x64xf32, #tpu.memory_space<vmem>>, vector<1x64xf32>
    %141 = vector.broadcast %140 : vector<1x64xf32> to vector<16x64xf32>
    %142 = arith.addf %139, %141 : vector<16x64xf32>
    %c0_55 = arith.constant 0 : index
    %c0_56 = arith.constant 0 : index
    %143 = vector.load %arg7[%c0_55, %c0_56] : memref<16x64xf32, #tpu.memory_space<vmem>>, vector<16x64xf32>
    tpu.vector_store %arg7[%c0_55, %c0_56], %142 {strides = array<i32>} : memref<16x64xf32, #tpu.memory_space<vmem>>, vector<16x64xf32>,
    return
  }
}

</mosaic_0001>

<bundles_post_ra>
// kernel: tpu_custom_call.1
= control target key start
LH: loop header
LB: loop body
LE: loop exit
PB: predicated region body
PF: predicated region fallthrough
CT: control target
= control target key end

     0   :  { %12 = vsyncpa [#allocation3], 0  ;;  %s1717_s0 = inlined_call_operand.hbm [shape: f32[16,64], index: 0, kind: input, shape index: {}]   ;;  %s1718_s1 = inlined_call_operand.hbm [shape: f32[16,64], index: 1, kind: input, shape index: {}]   ;;  %s1719_s2 = inlined_call_operand.hbm [shape: f32[16,64], index: 2, kind: input, shape index: {}]   ;;  %s1720_s3 = inlined_call_operand.hbm [shape: bf16[3,64,64], index: 3, kind: input, shape index: {}]   ;;  %s1721_s4 = inlined_call_operand.vmem [shape: f32[3,1,64], index: 4, kind: input, shape index: {}]   ;;  %s1722_s5 = inlined_call_operand.hbm [shape: bf16[64,64], index: 5, kind: input, shape index: {}]   ;;  %s1723_s6 = inlined_call_operand.vmem [shape: f32[1,64], index: 6, kind: input, shape index: {}]   ;;  %s1724_s7 = inlined_call_operand.hbm [shape: f32[16,64], index: 7, kind: output, shape index: {}]  }
   0x1   :  { %13 = vsyncpa [#allocation6], 0 }
   0x2   :  { %14 = vsyncpa [#allocation9], 0 }
   0x3   :  { %15 = vsyncpa [#allocation4], 0  ;;  %s1413_s24 = smov [#allocation5]   ;;  %s1414_s26 = smov [#allocation8]  }
   0x4   :  { %s33_s25 = sshll.u32 %s1413_s24, 4  ;;  %s57_s27 = sshll.u32 %s1414_s26, 4  ;;  %s34_s25 = int_to_ptr.vmem [resolvable:$true] %s33_s25  ;;  %s1472_s27 = int_to_ptr.vmem [resolvable:$true] %s57_s27 }
   0x5   :  { %s1273_s30 = scalar_lea.hbm %s1718_s1, 256 }
   0x6   :  { %p1274_p0 = scmp.ne.s32.totalorder %s1718_s1, %s1273_s30  ;;  %p1277_p1 = scmp.lt.u32.totalorder %s1273_s30, %s1718_s1 }
   0x8   :  { %p1279_p2 = pnand %p1277_p1, %p1274_p0 }
   0xa   :  { %1282 = shalt.err (!%p1279_p2)
}
   0xb   :  { %s1283_s12 = scalar_lea.vmem %s34_s25, 256  ;;  %p1288_p4 = scmp.lt.s32.totalorder %s34_s25, %s34_s25 }
   0xc   :  { %p1284_p3 = scmp.ne.s32.totalorder %s34_s25, %s1283_s12  ;;  %p1289_p5 = scmp.lt.s32.totalorder %s1283_s12, %s1283_s12 }
   0xe   :  { %p1290_p6 = por %p1289_p5, %p1288_p4 }
  0x10   :  { %p1291_p7 = pnand %p1290_p6, %p1284_p3 }
  0x12   :  { %1294 = shalt.err (!%p1291_p7)
}
  0x13   :  { %s1415_s13 = smov 128   ;;  %s1416_s14 = smov 8  }
  0x14   :  { %39 = dma.hbm_to_vmem [thread:$0]  %s1718_s1, 256, %s34_s25, [#allocation6], %s1415_s13, %s1415_s13, %s1416_s14  }
  0x15   :  { %s1295_s19 = scalar_lea.hbm %s1720_s3, 1536 }
  0x16   :  { %p1296_p8 = scmp.ne.s32.totalorder %s1720_s3, %s1295_s19  ;;  %p1299_p9 = scmp.lt.u32.totalorder %s1295_s19, %s1720_s3 }
  0x18   :  { %p1301_p10 = pnand %p1299_p9, %p1296_p8 }
  0x1a   :  { %1304 = shalt.err (!%p1301_p10)
}
  0x1b   :  { %s1305_s24 = scalar_lea.vmem %s1472_s27, 1536  ;;  %p1310_p12 = scmp.lt.s32.totalorder %s1472_s27, %s1472_s27 }
  0x1c   :  { %p1306_p11 = scmp.ne.s32.totalorder %s1472_s27, %s1305_s24  ;;  %p1311_p13 = scmp.lt.s32.totalorder %s1305_s24, %s1305_s24 }
  0x1e   :  { %p1312_p0 = por %p1311_p13, %p1310_p12 }
  0x20   :  { %p1313_p1 = pnand %p1312_p0, %p1306_p11 }
  0x22   :  { %1316 = shalt.err (!%p1313_p1)
}
  0x23   :  { %s1417_s1 = smov 64   ;;  %s1418_s25 = smov 4  }
  0x24   :  { %63 = dma.hbm_to_vmem [thread:$0]  %s1720_s3, 1536, %s1472_s27, [#allocation9], %s1417_s1, %s1417_s1, %s1418_s25  }
  0x25   :  { %s1419_s29 = smov [#allocation2]   ;;  %s1420_s8 = smov [#allocation7]  }
  0x26   :  { %s21_s30 = sshll.u32 %s1419_s29, 4  ;;  %s45_s9 = sshll.u32 %s1420_s8, 4  ;;  %s22_s30 = int_to_ptr.vmem [resolvable:$true] %s21_s30  ;;  %s1509_s9 = int_to_ptr.vmem [resolvable:$true] %s45_s9 }
  0x27   :  { %s1317_s12 = scalar_lea.hbm %s1717_s0, 256 }
  0x28   :  { %p1318_p2 = scmp.ne.s32.totalorder %s1717_s0, %s1317_s12  ;;  %p1321_p3 = scmp.lt.u32.totalorder %s1317_s12, %s1717_s0 }
  0x2a   :  { %p1323_p4 = pnand %p1321_p3, %p1318_p2 }
  0x2c   :  { %1326 = shalt.err (!%p1323_p4)
}
  0x2d   :  { %s1327_s3 = scalar_lea.vmem %s22_s30, 256  ;;  %p1332_p6 = scmp.lt.s32.totalorder %s22_s30, %s22_s30 }
  0x2e   :  { %p1328_p5 = scmp.ne.s32.totalorder %s22_s30, %s1327_s3  ;;  %p1333_p7 = scmp.lt.s32.totalorder %s1327_s3, %s1327_s3 }
  0x30   :  { %p1334_p8 = por %p1333_p7, %p1332_p6 }
  0x32   :  { %p1335_p9 = pnand %p1334_p8, %p1328_p5 }
  0x34   :  { %1338 = shalt.err (!%p1335_p9)
}
  0x35   :  { %27 = dma.hbm_to_vmem [thread:$0]  %s1717_s0, 256, %s22_s30, [#allocation3], %s1415_s13, %s1415_s13, %s1416_s14  }
  0x36   :  { %s1339_s22 = scalar_lea.hbm %s1719_s2, 256 }
  0x37   :  { %p1340_p10 = scmp.ne.s32.totalorder %s1719_s2, %s1339_s22  ;;  %p1343_p11 = scmp.lt.u32.totalorder %s1339_s22, %s1719_s2 }
  0x39   :  { %p1345_p12 = pnand %p1343_p11, %p1340_p10 }
  0x3b   :  { %1348 = shalt.err (!%p1345_p12)
}
  0x3c   :  { %s1349_s29 = scalar_lea.vmem %s1509_s9, 256  ;;  %p1354_p0 = scmp.lt.s32.totalorder %s1509_s9, %s1509_s9 }
  0x3d   :  { %p1350_p13 = scmp.ne.s32.totalorder %s1509_s9, %s1349_s29  ;;  %p1355_p1 = scmp.lt.s32.totalorder %s1349_s29, %s1349_s29 }
  0x3f   :  { %p1356_p2 = por %p1355_p1, %p1354_p0 }
  0x41   :  { %p1357_p3 = pnand %p1356_p2, %p1350_p13 }
  0x43   :  { %1360 = shalt.err (!%p1357_p3)
}
  0x44   :  { %51 = dma.hbm_to_vmem [thread:$0]  %s1719_s2, 256, %s1509_s9, [#allocation6], %s1415_s13, %s1415_s13, %s1416_s14  }
  0x45   :  { %s1421_s8 = smov [#allocation10]   ;;  %s1361_s15 = scalar_lea.hbm %s1722_s5, 512 }
  0x46   :  { %s71_s10 = sshll.u32 %s1421_s8, 4  ;;  %p1362_p4 = scmp.ne.s32.totalorder %s1722_s5, %s1361_s15  ;;  %s72_s10 = int_to_ptr.vmem [resolvable:$true] %s71_s10 }
  0x47   :  { %p1365_p5 = scmp.lt.u32.totalorder %s1361_s15, %s1722_s5 }
  0x49   :  { %p1367_p6 = pnand %p1365_p5, %p1362_p4 }
  0x4b   :  { %1370 = shalt.err (!%p1367_p6)
}
  0x4c   :  { %s1371_s27 = scalar_lea.vmem %s72_s10, 512  ;;  %p1376_p8 = scmp.lt.s32.totalorder %s72_s10, %s72_s10 }
  0x4d   :  { %p1372_p7 = scmp.ne.s32.totalorder %s72_s10, %s1371_s27  ;;  %p1377_p9 = scmp.lt.s32.totalorder %s1371_s27, %s1371_s27 }
  0x4f   :  { %p1378_p10 = por %p1377_p9, %p1376_p8 }
  0x51   :  { %p1379_p11 = pnand %p1378_p10, %p1372_p7 }
  0x53   :  { %1382 = shalt.err (!%p1379_p11)
}
  0x54   :  { %77 = dma.hbm_to_vmem [thread:$0]  %s1722_s5, 512, %s72_s10, [#allocation9], %s1417_s1, %s1417_s1, %s1418_s25  }
  0x55   :  { %1405 = dma.done.wait [#allocation3], 256  }
  0x56   :  { %1406 = vsyncadd [#allocation3], 4294967040 }
  0x57   :  { %1407 = dma.done.wait [#allocation6], 512  }
  0x58   :  { %1408 = vsyncadd [#allocation6], 4294966784 }
  0x59   :  { %1409 = dma.done.wait [#allocation9], 2048  }
  0x5a   :  { %1410 = vsyncadd [#allocation9], 4294965248  ;;  %v1422_v0 = vmov 0.0   ;;  %vm1423_vm0 = vmmov 0   ;;  %v1225_v1 = vld [vmem:[#allocation8 + $0x20] sm:$0xff]   ;;  %v1226_v2 = vld [vmem:[#allocation8 + $0x28] sm:$0xff]   ;;  %v362_v39 = vlaneseq }
  0x5b   :  { %1107 = vmatprep.subr.bf16.mxu1 %v1422_v0  ;;  %1095 = vmatprep.subr.bf16.mxu0 %v1422_v0  ;;  %v1227_v3 = vld [vmem:[#allocation8] sm:$0xff]   ;;  %v1229_v4 = vld [vmem:[#allocation8 + $0x8] sm:$0xff]   ;;  %v1228_v5 = vld [vmem:[#allocation8 + $0x30] sm:$0xff]   ;;  %vm144_vm1 = vcmask 523264   ;;  %vm407_vm2 = vcmask 130048   ;;  %s1425_s20 = smov 112  }
  0x5c   :  { %1115 = vmatprep.mubr.msk.bf16.mxu1 %vm1423_vm0, %v1422_v0  ;;  %1103 = vmatprep.mubr.msk.bf16.mxu0 %vm1423_vm0, %v1422_v0  ;;  %v1230_v6 = vld [vmem:[#allocation8 + $0x38] sm:$0xff]   ;;  %v1231_v7 = vld [vmem:[#allocation8 + $0x10] sm:$0xff]   ;;  %v99_v8 = vld [vmem:[#allocation5] sm:$0xff]  ;;  %v363_v40 = vshrl.u32 %v362_v39, 7  ;;  %v390_v41 = vand.u32 127, %v362_v39  ;;  %s1426_s21 = smov 80  }
  0x5d   :  { %1108 = vmatpush3.bf16.msra.mxu1 %v1225_v1  ;;  %1096 = vmatpush3.bf16.msra.mxu0 %v1227_v3  ;;  %v100_v9 = vld [vmem:[#allocation5 + $0x8] sm:$0xff]  ;;  %v1232_v10 = vld [vmem:[#allocation8 + $0x18] sm:$0xff]   ;;  %v96_v11 = vld [vmem:[#allocation2] sm:$0xff]  ;;  %v1424_v46 = vmov -1e+30   ;;  %s1427_s24 = smov 96  }
  0x5e   :  { %1109 = vmatprep.subr.bf16.mxu1 %v1422_v0  ;;  %1097 = vmatprep.subr.bf16.mxu0 %v1422_v0  ;;  %v97_v12 = vld [vmem:[#allocation2 + $0x8] sm:$0xff]  ;;  %v101_v13 = vpack.c.bf16 %v100_v9, %v99_v8  ;;  %v1032_v15 = vld [vmem:[%s1721_s4 + $0x1] ss:$0 sm:$0xff]  ;;  %v1025_v17 = vld [vmem:[%s1721_s4] ss:$0 sm:$0xff]  ;;  %v364_v42 = vadd.s32 8, %v363_v40 }
  0x5f   :  { %v98_v14 = vpack.c.bf16 %v97_v12, %v96_v11  ;;  %v1233_v32 = vld [vmem:[#allocation8 + $0x40] sm:$0xff]   ;;  %v1234_v33 = vld [vmem:[#allocation8 + $0x48] sm:$0xff]   ;;  %v1235_v34 = vld [vmem:[#allocation8 + $0x50] sm:$0xff]   ;;  %v369_v43 = vand.u32 1, %v363_v40  ;;  %v395_v44 = vand.u32 1, %v390_v41  ;;  %s1429_s26 = smov 32  }
  0x60   :  { %v1236_v35 = vld [vmem:[#allocation8 + $0x58] sm:$0xff]   ;;  %v102_v36 = vld [vmem:[#allocation7] sm:$0xff]  ;;  %v376_v45 = vand.u32 1, %v364_v42  ;;  %s1430_s28 = smov 48   ;;  %vm914_vm5 = vcmask 261120   ;;  %vm917_vm6 = vcmask 392192  }
  0x61   :  { %1110 = vmatpush3.bf16.msra.mxu1 %v1226_v2  ;;  %1098 = vmatpush3.bf16.msra.mxu0 %v1229_v4  ;;  %v103_v37 = vld [vmem:[#allocation7 + $0x8] sm:$0xff]  ;;  %vm403_vm3 = vcmp.eq.s32.totalorder %v369_v43, %v395_v44  ;;  %s1431_s30 = smov [#allocation11]  }
  0x62   :  { %1111 = vmatprep.subr.bf16.mxu1 %v1422_v0  ;;  %1099 = vmatprep.subr.bf16.mxu0 %v1422_v0  ;;  %v104_v38 = vpack.c.bf16 %v103_v37, %v102_v36  ;;  %vm404_vm4 = vcmp.eq.s32.totalorder %v376_v45, %v395_v44  ;;  %v1605_v47 = vsel %vm403_vm3, 0.0, %v1424_v46  ;;  %s1011_s8 = sshll.u32 %s1431_s30, 4  ;;  %s1012_s8 = int_to_ptr.vmem [resolvable:$true] %s1011_s8 }
  0x63   :  { %v1607_v49 = vsel %vm404_vm4, 0.0, %v1424_v46  ;;  %s1383_s10 = scalar_lea.vmem %s1012_s8, 256  ;;  %p1388_p13 = scmp.lt.s32.totalorder %s1012_s8, %s1012_s8 }
  0x64   :  { %p1384_p12 = scmp.ne.s32.totalorder %s1012_s8, %s1383_s10  ;;  %p1389_p0 = scmp.lt.s32.totalorder %s1383_s10, %s1383_s10 }
  0x65   :  { %1112 = vmatpush3.bf16.msra.mxu1 %v1228_v5  ;;  %1100 = vmatpush3.bf16.msra.mxu0 %v1231_v7  ;;  %v1039_v7 = vld [vmem:[%s1721_s4 + $0x2] ss:$0 sm:$0xff]  ;;  %s1428_s4 = smov 16  }
  0x66   :  { %1113 = vmatprep.subr.bf16.mxu1 %v1422_v0  ;;  %1101 = vmatprep.subr.bf16.mxu0 %v1422_v0  ;;  %p1390_p1 = por %p1389_p0, %p1388_p13 }
  0x68   :  { %p1391_p2 = pnand %p1390_p1, %p1384_p12 }
  0x69   :  { %1114 = vmatpush3.bf16.msra.mxu1 %v1230_v6  ;;  %1102 = vmatpush3.bf16.msra.mxu0 %v1232_v10 }
  0x6a   :  { %1131 = vmatprep.subr.bf16.mxu1 %v1422_v0  ;;  %1119 = vmatprep.subr.bf16.mxu0 %v1422_v0 }
  0x6c   :  { %1116 = vmatmul.mubr.msk.bf16.vlgmr.msra.gmra.mrb[0].mxu1 %vm144_vm1, %v101_v13  ;;  %1104 = vmatmul.mubr.msk.bf16.vlgmr.msra.gmra.mrb[0].mxu0 %vm144_vm1, %v98_v14 }
  0x6d   :  { %1133 = vmatprep.mubr.msk.bf16.mxu1 %vm1423_vm0, %v1422_v0  ;;  %1127 = vmatprep.mubr.msk.bf16.mxu0 %vm1423_vm0, %v1422_v0 }
  0x6e   :  { %1120 = vmatpush3.bf16.msra.mxu0 %v1233_v32 }
  0x6f   :  { %1121 = vmatprep.subr.bf16.mxu0 %v1422_v0 }
  0x72   :  { %1122 = vmatpush3.bf16.msra.mxu0 %v1234_v33 }
  0x73   :  { %1123 = vmatprep.subr.bf16.mxu0 %v1422_v0 }
  0x76   :  { %1124 = vmatpush3.bf16.msra.mxu0 %v1235_v34 }
  0x77   :  { %1125 = vmatprep.subr.bf16.mxu0 %v1422_v0 }
  0x7a   :  { %1126 = vmatpush3.bf16.msra.mxu0 %v1236_v35 }
  0x7b   :  { %1155 = vmatprep.subr.bf16.mxu0 %v1422_v0 }
  0x7d   :  { %1128 = vmatmul.mubr.msk.bf16.vlgmr.msra.gmra.mrb[4].mxu0 %vm144_vm1, %v104_v38 }
  0x7e   :  { %1157 = vmatprep.mubr.msk.bf16.mxu0 %vm1423_vm0, %v1422_v0 }
 0x13f   :  { %v267_v16 = vpop.f32.mrb[0].mxu1  ;;  %v182_v20 = vpop.f32.mrb[0].mxu0 }
 0x140   :  { %v1117_v18 = vpop.f32.mrb[1].mxu1  ;;  %v268_v21 = vadd.f32 %v1032_v15, %v267_v16  ;;  %v183_v24 = vadd.f32 %v1025_v17, %v182_v20  ;;  %v1105_v25 = vpop.f32.mrb[1].mxu0 }
 0x141   :  { %v270_v19 = vpop.f32.mrb[2].mxu1  ;;  %v185_v26 = vpop.f32.mrb[2].mxu0 }
 0x142   :  { %v271_v22 = vadd.f32 %v1032_v15, %v270_v19  ;;  %v1118_v23 = vpop.f32.mrb[3].mxu1  ;;  %v186_v28 = vadd.f32 %v1025_v17, %v185_v26  ;;  %v1106_v29 = vpop.f32.mrb[3].mxu0 }
 0x144   :  { %v1587_v27 = vpack.c.bf16 %v271_v22, %v268_v21  ;;  %v1589_v30 = vpack.c.bf16 %v186_v28, %v183_v24 }
 0x146   :  { %v412_v31 = vsel %vm407_vm2, %v1587_v27, 0 }
 0x147   :  { %1132 = vmatpush3.bf16.xpose.msra.mxu1 %v412_v31 }
 0x148   :  { %1137 = vmatprep.subr.bf16.mxu1 %v1422_v0 }
 0x14e   :  { %1134 = vmatmul.mubr.msk.bf16.vlgmr.msra.gmra.mrb[4].mxu1 %vm407_vm2, %v1589_v30 }
 0x14f   :  { %1139 = vmatprep.mubr.msk.bf16.mxu1 %vm1423_vm0, %v1422_v0 }
 0x150   :  { %v352_v4 = vpop.f32.mrb[4].mxu0 }
 0x151   :  { %v1129_v5 = vpop.f32.mrb[5].mxu0  ;;  %v353_v9 = vadd.f32 %v1039_v7, %v352_v4 }
 0x152   :  { %v355_v6 = vpop.f32.mrb[6].mxu0 }
 0x153   :  { %v1130_v8 = vpop.f32.mrb[7].mxu0  ;;  %v356_v10 = vadd.f32 %v1039_v7, %v355_v6 }
 0x155   :  { %v1624_v11 = vpack.c.bf16 %v356_v10, %v353_v9 }
 0x157   :  { %1138 = vmatpush3.bf16.msra.mxu1 %v1624_v11 }
 0x158   :  { %1143 = vmatprep.subr.bf16.mxu1 %v1422_v0 }
 0x221   :  { %v448_v48 = vpop.f32.mrb[4].mxu1 }
 0x222   :  { %v449_v50 = vadd.f32 %v448_v48, %v1605_v47  ;;  %v1135_v51 = vpop.f32.mrb[5].mxu1 }
 0x223   :  { %v451_v52 = vpop.f32.mrb[6].mxu1 }
 0x224   :  { %v452_v53 = vadd.f32 %v451_v52, %v1607_v49  ;;  %v1136_v54 = vpop.f32.mrb[7].mxu1  ;;  %v455_v55 = vsel %vm407_vm2, %v449_v50, -inf }
 0x225   :  { %456 = vmax.xlane.f32.xlu0 %v455_v55 }
 0x226   :  { %v458_v56 = vsel %vm407_vm2, %v452_v53, -inf }
 0x229   :  { %459 = vmax.xlane.f32.xlu0 %v458_v56 }
 0x23f   :  { %526 = vrot.lane.b32.xlu0 %v1587_v27, %s1425_s20 }
 0x243   :  { %769 = vrot.lane.b32.xlu0 %v1587_v27, %s1426_s21 }
 0x2b2   :  { %v457_v57 = vpop.xlane.xlu0 %456 }
 0x2b3   :  { %v461_v58 = vsub.f32 %v449_v50, %v457_v57 }
 0x2b5   :  { %v463_v59 = vmul.f32 1.442695, %v461_v58 }
 0x2b6   :  { %v460_v60 = vpop.xlane.xlu0 %459 }
 0x2b7   :  { %1241 = vpow2.f32 %v463_v59  ;;  %v462_v61 = vsub.f32 %v452_v53, %v460_v60 }
 0x2b9   :  { %v465_v62 = vmul.f32 1.442695, %v462_v61 }
 0x2ba   :  { %v527_v15 = vpop.permute.xlu0 %526 }
 0x2bb   :  { %1243 = vpow2.f32 %v465_v62  ;;  %v532_v24 = vsel %vm407_vm2, %v527_v15, 0 }
 0x2be   :  { %v770_v22 = vpop.permute.xlu0 %769 }
 0x2bf   :  { %v775_v26 = vsel %vm407_vm2, %v770_v22, 0 }
 0x2c1   :  { %v1242_v63 = vpop.eup %1241 }
 0x2c2   :  { %v467_v1 = vsel %vm407_vm2, %v1242_v63, 0.0 }
 0x2c3   :  { %468 = vadd.xlane.f32.xlu1 %v467_v1 }
 0x2c5   :  { %v1244_v2 = vpop.eup %1243 }
 0x2c6   :  { %v470_v3 = vsel %vm407_vm2, %v1244_v2, 0.0 }
 0x2c7   :  { %471 = vadd.xlane.f32.xlu1 %v470_v3 }
 0x2d8   :  { %523 = vrot.lane.b32.xlu1 %v1589_v30, %s1425_s20 }
 0x2dc   :  { %648 = vrot.lane.b32.xlu1 %v1587_v27, %s1427_s24 }
 0x2e0   :  { %646 = vrot.lane.b32.xlu1 %v1589_v30, %s1427_s24 }
 0x2e4   :  { %767 = vrot.lane.b32.xlu1 %v1589_v30, %s1426_s21 }
 0x350   :  { %v469_v12 = vpop.xlane.xlu1 %468 }
 0x351   :  { %1245 = vrcp.f32 %v469_v12 }
 0x354   :  { %v472_v13 = vpop.xlane.xlu1 %471 }
 0x355   :  { %1247 = vrcp.f32 %v472_v13 }
 0x358   :  { %v524_v14 = vpop.permute.xlu1 %523 }
 0x35b   :  { %v1246_v17 = vpop.eup %1245 }
 0x35c   :  { %v649_v16 = vpop.permute.xlu1 %648  ;;  %v475_v20 = vmul.f32 %v1246_v17, %v1242_v63 }
 0x35d   :  { %v654_v18 = vsel %vm407_vm2, %v649_v16, 0 }
 0x35e   :  { %1156 = vmatpush3.bf16.xpose.msra.mxu0 %v654_v18 }
 0x35f   :  { %v1248_v19 = vpop.eup %1247  ;;  %1167 = vmatprep.subr.bf16.mxu0 %v1422_v0 }
 0x360   :  { %v476_v21 = vmul.f32 %v1248_v19, %v1244_v2  ;;  %v647_v25 = vpop.permute.xlu1 %646 }
 0x362   :  { %v477_v23 = vpack.c.bf16 %v476_v21, %v475_v20 }
 0x364   :  { %1140 = vmatmul.mubr.msk.bf16.vlgmr.msra.gmra.mrb[8].mxu1 %vm407_vm2, %v477_v23  ;;  %v768_v27 = vpop.permute.xlu1 %767 }
 0x365   :  { %1144 = vmatpush3.bf16.xpose.msra.mxu1 %v532_v24  ;;  %1158 = vmatmul.mubr.msk.bf16.vlgmr.msra.gmra.mrb[8].mxu0 %vm407_vm2, %v647_v25 }
 0x366   :  { %1168 = vmatpush3.bf16.xpose.msra.mxu0 %v775_v26  ;;  %1145 = vmatprep.mubr.msk.bf16.mxu1 %vm1423_vm0, %v1422_v0 }
 0x367   :  { %1169 = vmatprep.mubr.msk.bf16.mxu0 %vm1423_vm0, %v1422_v0  ;;  %1149 = vmatprep.subr.bf16.mxu1 %v1422_v0 }
 0x368   :  { %1179 = vmatprep.subr.bf16.mxu0 %v1422_v0 }
 0x36c   :  { %1146 = vmatmul.mubr.msk.bf16.vlgmr.msra.gmra.mrb[12].mxu1 %vm407_vm2, %v524_v14 }
 0x36d   :  { %1170 = vmatmul.mubr.msk.bf16.vlgmr.msra.gmra.mrb[12].mxu0 %vm407_vm2, %v768_v27  ;;  %1151 = vmatprep.mubr.msk.bf16.mxu1 %vm1423_vm0, %v1422_v0 }
 0x36e   :  { %1187 = vmatprep.mubr.msk.bf16.mxu0 %vm1423_vm0, %v1422_v0 }
 0x437   :  { %v1652_v28 = vpop.f32.mrb[8].mxu1 }
 0x438   :  { %v1141_v29 = vpop.f32.mrb[9].mxu1  ;;  %v690_v30 = vpop.f32.mrb[8].mxu0 }
 0x439   :  { %v1654_v31 = vpop.f32.mrb[10].mxu1  ;;  %v1159_v32 = vpop.f32.mrb[9].mxu0  ;;  %v691_v42 = vadd.f32 %v690_v30, %v1605_v47 }
 0x43a   :  { %v1142_v33 = vpop.f32.mrb[11].mxu1  ;;  %v693_v34 = vpop.f32.mrb[10].mxu0 }
 0x43b   :  { %v1160_v35 = vpop.f32.mrb[11].mxu0  ;;  %v694_v52 = vadd.f32 %v693_v34, %v1607_v49  ;;  %v697_v53 = vsel %vm407_vm2, %v691_v42, -inf }
 0x43d   :  { %v700_v56 = vsel %vm407_vm2, %v694_v52, -inf }
 0x43f   :  { %v568_v36 = vpop.f32.mrb[12].mxu1 }
 0x440   :  { %v569_v37 = vadd.f32 %v568_v36, %v1605_v47  ;;  %v1147_v38 = vpop.f32.mrb[13].mxu1  ;;  %v811_v39 = vpop.f32.mrb[12].mxu0 }
 0x441   :  { %v571_v40 = vpop.f32.mrb[14].mxu1  ;;  %v1171_v41 = vpop.f32.mrb[13].mxu0  ;;  %v812_v55 = vadd.f32 %v811_v39, %v1605_v47 }
 0x442   :  { %v572_v43 = vadd.f32 %v571_v40, %v1607_v49  ;;  %v1148_v44 = vpop.f32.mrb[15].mxu1  ;;  %v814_v45 = vpop.f32.mrb[14].mxu0  ;;  %v575_v46 = vsel %vm407_vm2, %v569_v37, -inf }
 0x443   :  { %576 = vmax.xlane.f32.xlu0 %v575_v46  ;;  %v1172_v48 = vpop.f32.mrb[15].mxu0  ;;  %v815_v50 = vadd.f32 %v814_v45, %v1607_v49  ;;  %v818_v57 = vsel %vm407_vm2, %v812_v55, -inf }
 0x444   :  { %v578_v51 = vsel %vm407_vm2, %v572_v43, -inf }
 0x445   :  { %579 = vmax.xlane.f32.xlu1 %v578_v51  ;;  %v821_v54 = vsel %vm407_vm2, %v815_v50, -inf  ;;  %v1237_v51 = vld [vmem:[#allocation10] sm:$0xff]  }
 0x446   :  { %1180 = vmatpush3.bf16.msra.mxu0 %v1237_v51 }
 0x447   :  { %698 = vmax.xlane.f32.xlu0 %v697_v53  ;;  %1181 = vmatprep.subr.bf16.mxu0 %v1422_v0 }
 0x449   :  { %822 = vmax.xlane.f32.xlu1 %v821_v54  ;;  %v1238_v54 = vld [vmem:[#allocation10 + $0x8] sm:$0xff]  }
 0x44a   :  { %1182 = vmatpush3.bf16.msra.mxu0 %v1238_v54 }
 0x44b   :  { %701 = vmax.xlane.f32.xlu0 %v700_v56  ;;  %1183 = vmatprep.subr.bf16.mxu0 %v1422_v0 }
 0x44f   :  { %819 = vmax.xlane.f32.xlu0 %v818_v57 }
 0x4d0   :  { %v577_v58 = vpop.xlane.xlu0 %576 }
 0x4d1   :  { %v581_v3 = vsub.f32 %v569_v37, %v577_v58  ;;  %v1239_v58 = vld [vmem:[#allocation10 + $0x10] sm:$0xff]  }
 0x4d2   :  { %v580_v59 = vpop.xlane.xlu1 %579  ;;  %1184 = vmatpush3.bf16.msra.mxu0 %v1239_v58 }
 0x4d3   :  { %v582_v4 = vsub.f32 %v572_v43, %v580_v59  ;;  %v583_v8 = vmul.f32 1.442695, %v581_v3  ;;  %1185 = vmatprep.subr.bf16.mxu0 %v1422_v0 }
 0x4d4   :  { %v699_v60 = vpop.xlane.xlu0 %698 }
 0x4d5   :  { %v703_v61 = vsub.f32 %v691_v42, %v699_v60  ;;  %v585_v9 = vmul.f32 1.442695, %v582_v4 }
 0x4d6   :  { %v823_v62 = vpop.xlane.xlu1 %822 }
 0x4d7   :  { %v705_v49 = vmul.f32 1.442695, %v703_v61  ;;  %v825_v63 = vsub.f32 %v815_v50, %v823_v62  ;;  %v1240_v61 = vld [vmem:[#allocation10 + $0x18] sm:$0xff]  }
 0x4d8   :  { %v702_v1 = vpop.xlane.xlu0 %701  ;;  %1186 = vmatpush3.bf16.msra.mxu0 %v1240_v61 }
 0x4d9   :  { %1249 = vpow2.f32 %v705_v49  ;;  %v704_v2 = vsub.f32 %v694_v52, %v702_v1  ;;  %v828_v5 = vmul.f32 1.442695, %v825_v63 }
 0x4db   :  { %v707_v47 = vmul.f32 1.442695, %v704_v2 }
 0x4dc   :  { %v820_v6 = vpop.xlane.xlu0 %819 }
 0x4dd   :  { %1251 = vpow2.f32 %v707_v47  ;;  %v824_v7 = vsub.f32 %v812_v55, %v820_v6 }
 0x4de   :  { %1253 = vpow2.f32 %v828_v5 }
 0x4df   :  { %v826_v10 = vmul.f32 1.442695, %v824_v7 }
 0x4e1   :  { %1255 = vpow2.f32 %v826_v10 }
 0x4e2   :  { %1257 = vpow2.f32 %v583_v8 }
 0x4e3   :  { %v1250_v12 = vpop.eup %1249  ;;  %1259 = vpow2.f32 %v585_v9 }
 0x4e4   :  { %v709_v13 = vsel %vm407_vm2, %v1250_v12, 0.0 }
 0x4e5   :  { %710 = vadd.xlane.f32.xlu0 %v709_v13 }
 0x4e7   :  { %v1252_v14 = vpop.eup %1251 }
 0x4e8   :  { %v712_v15 = vsel %vm407_vm2, %v1252_v14, 0.0  ;;  %v1254_v16 = vpop.eup %1253 }
 0x4e9   :  { %713 = vadd.xlane.f32.xlu1 %v712_v15  ;;  %v833_v20 = vsel %vm407_vm2, %v1254_v16, 0.0 }
 0x4eb   :  { %v1256_v17 = vpop.eup %1255 }
 0x4ec   :  { %v1258_v18 = vpop.eup %1257  ;;  %v830_v19 = vsel %vm407_vm2, %v1256_v17, 0.0 }
 0x4ed   :  { %v1260_v21 = vpop.eup %1259  ;;  %831 = vadd.xlane.f32.xlu0 %v830_v19  ;;  %834 = vadd.xlane.f32.xlu1 %v833_v20  ;;  %v587_v22 = vsel %vm407_vm2, %v1258_v18, 0.0 }
 0x4ee   :  { %v590_v23 = vsel %vm407_vm2, %v1260_v21, 0.0 }
 0x4f1   :  { %588 = vadd.xlane.f32.xlu0 %v587_v22  ;;  %591 = vadd.xlane.f32.xlu1 %v590_v23 }
 0x502   :  { %720 = vrot.lane.b32.xlu1 %v1624_v11, %s1427_s24 }
 0x506   :  { %841 = vrot.lane.b32.xlu1 %v1624_v11, %s1426_s21 }
 0x507   :  { %599 = vrot.lane.b32.xlu0 %v1624_v11, %s1425_s20 }
 0x572   :  { %v711_v24 = vpop.xlane.xlu0 %710 }
 0x576   :  { %v714_v25 = vpop.xlane.xlu1 %713 }
 0x57a   :  { %v832_v26 = vpop.xlane.xlu0 %831  ;;  %v835_v27 = vpop.xlane.xlu1 %834 }
 0x57e   :  { %v589_v29 = vpop.xlane.xlu0 %588  ;;  %v592_v30 = vpop.xlane.xlu1 %591 }
 0x57f   :  { %1261 = vrcp.f32 %v589_v29 }
 0x580   :  { %1263 = vrcp.f32 %v592_v30 }
 0x581   :  { %1265 = vrcp.f32 %v714_v25 }
 0x582   :  { %v600_v32 = vpop.permute.xlu0 %599  ;;  %1267 = vrcp.f32 %v711_v24  ;;  %v721_v38 = vpop.permute.xlu1 %720 }
 0x583   :  { %1150 = vmatpush3.bf16.msra.mxu1 %v600_v32  ;;  %1269 = vrcp.f32 %v832_v26 }
 0x584   :  { %1161 = vmatprep.subr.bf16.mxu1 %v1422_v0  ;;  %1271 = vrcp.f32 %v835_v27 }
 0x586   :  { %v842_v45 = vpop.permute.xlu1 %841 }
 0x589   :  { %v1262_v33 = vpop.eup %1261 }
 0x58a   :  { %v1264_v34 = vpop.eup %1263  ;;  %v595_v35 = vmul.f32 %v1262_v33, %v1258_v18 }
 0x58b   :  { %v596_v36 = vmul.f32 %v1264_v34, %v1260_v21  ;;  %v1266_v37 = vpop.eup %1265  ;;  %v1053_v21 = vld [vmem:[%s1723_s6] ss:$0 sm:$0xff] }
 0x58c   :  { %v1268_v39 = vpop.eup %1267  ;;  %v718_v40 = vmul.f32 %v1266_v37, %v1252_v14 }
 0x58d   :  { %v597_v11 = vpack.c.bf16 %v596_v36, %v595_v35  ;;  %v717_v41 = vmul.f32 %v1268_v39, %v1250_v12  ;;  %v1270_v42 = vpop.eup %1269 }
 0x58e   :  { %v1272_v44 = vpop.eup %1271  ;;  %v838_v46 = vmul.f32 %v1270_v42, %v1256_v17 }
 0x58f   :  { %1152 = vmatmul.mubr.msk.bf16.vlgmr.msra.gmra.mrb[16].mxu1 %vm407_vm2, %v597_v11  ;;  %v719_v43 = vpack.c.bf16 %v718_v40, %v717_v41  ;;  %v839_v48 = vmul.f32 %v1272_v44, %v1254_v16 }
 0x590   :  { %1162 = vmatpush3.bf16.msra.mxu1 %v721_v38  ;;  %1163 = vmatprep.mubr.msk.bf16.mxu1 %vm1423_vm0, %v1422_v0 }
 0x591   :  { %1173 = vmatprep.subr.bf16.mxu1 %v1422_v0  ;;  %v840_v50 = vpack.c.bf16 %v839_v48, %v838_v46 }
 0x597   :  { %1164 = vmatmul.mubr.msk.bf16.vlgmr.msra.gmra.mrb[20].mxu1 %vm407_vm2, %v719_v43 }
 0x598   :  { %1174 = vmatpush3.bf16.msra.mxu1 %v842_v45  ;;  %1175 = vmatprep.mubr.msk.bf16.mxu1 %vm1423_vm0, %v1422_v0 }
 0x59f   :  { %1176 = vmatmul.mubr.msk.bf16.vlgmr.msra.gmra.mrb[24].mxu1 %vm407_vm2, %v840_v50 }
 0x662   :  { %v639_v52 = vpop.f32.mrb[16].mxu1 }
 0x663   :  { %v1153_v53 = vpop.f32.mrb[17].mxu1 }
 0x664   :  { %v642_v55 = vpop.f32.mrb[18].mxu1 }
 0x665   :  { %v1210_v56 = vpack.i.bf16 %v642_v55, %v639_v52  ;;  %v1154_v57 = vpop.f32.mrb[19].mxu1 }
 0x667   :  { %1211 = vrot.lane.b32.xlu1 %v1210_v56, %s1428_s4 }
 0x66a   :  { %v760_v59 = vpop.f32.mrb[20].mxu1 }
 0x66b   :  { %v1165_v60 = vpop.f32.mrb[21].mxu1 }
 0x66c   :  { %v763_v62 = vpop.f32.mrb[22].mxu1 }
 0x66d   :  { %v1215_v49 = vpack.i.bf16 %v763_v62, %v760_v59  ;;  %v1166_v63 = vpop.f32.mrb[23].mxu1 }
 0x66f   :  { %1216 = vrot.lane.b32.xlu0 %v1215_v49, %s1429_s26 }
 0x672   :  { %v881_v1 = vpop.f32.mrb[24].mxu1 }
 0x673   :  { %v1177_v2 = vpop.f32.mrb[25].mxu1 }
 0x674   :  { %v884_v3 = vpop.f32.mrb[26].mxu1 }
 0x675   :  { %v1220_v4 = vpack.i.bf16 %v884_v3, %v881_v1  ;;  %v1178_v5 = vpop.f32.mrb[27].mxu1 }
 0x677   :  { %1221 = vrot.lane.b32.xlu1 %v1220_v4, %s1430_s28 }
 0x6d9   :  { %v1212_v47 = vpop.permute.xlu1 %1211 }
 0x6da   :  { %v1214_v7 = vunpack.i.h.bf16 %v1212_v47  ;;  %v1213_v8 = vunpack.i.l.bf16 %v1212_v47 }
 0x6dc   :  { %v913_v12 = vsel %vm407_vm2, %v1654_v31, %v1214_v7  ;;  %v912_v13 = vsel %vm407_vm2, %v1652_v28, %v1213_v8 }
 0x6e1   :  { %v1217_v6 = vpop.permute.xlu0 %1216 }
 0x6e2   :  { %v1219_v0 = vunpack.i.h.bf16 %v1217_v6  ;;  %v1218_v9 = vunpack.i.l.bf16 %v1217_v6 }
 0x6e4   :  { %v915_v16 = vsel %vm914_vm5, %v912_v13, %v1218_v9  ;;  %v916_v17 = vsel %vm914_vm5, %v913_v12, %v1219_v0 }
 0x6e9   :  { %v1222_v10 = vpop.permute.xlu1 %1221 }
 0x6ea   :  { %v1224_v14 = vunpack.i.h.bf16 %v1222_v10  ;;  %v1223_v15 = vunpack.i.l.bf16 %v1222_v10 }
 0x6ec   :  { %v918_v18 = vsel %vm917_vm6, %v915_v16, %v1223_v15  ;;  %v919_v19 = vsel %vm917_vm6, %v916_v17, %v1224_v14 }
 0x6ed   :  { %v920_v20 = vpack.c.bf16 %v919_v19, %v918_v18 }
 0x6ef   :  { %1188 = vmatmul.mubr.msk.bf16.vlgmr.msra.gmra.mrb[16].mxu0 %vm144_vm1, %v920_v20 }
 0x7c2   :  { %v997_v22 = vpop.f32.mrb[16].mxu0 }
 0x7c3   :  { %v998_v31 = vadd.f32 %v1053_v21, %v997_v22  ;;  %v1189_v23 = vpop.f32.mrb[17].mxu0 }
 0x7c4   :  { %v1000_v24 = vpop.f32.mrb[18].mxu0 }
 0x7c5   :  { %1004 = vst.msk [vmem:[#allocation11] sm:$0xff] %vm144_vm1, %v998_v31  ;;  %v1001_v28 = vadd.f32 %v1053_v21, %v1000_v24  ;;  %v1190_v25 = vpop.f32.mrb[19].mxu0 }
 0x7c7   :  { %1005 = vst.msk [vmem:[#allocation11 + $0x8] sm:$0xff] %vm144_vm1, %v1001_v28 }
 0x7c8   :  { %1394 = shalt.err (!%p1391_p2)
}
 0x7c9   :  { %s1395_s12 = scalar_lea.hbm %s1724_s7, 256 }
 0x7ca   :  { %p1396_p3 = scmp.ne.s32.totalorder %s1724_s7, %s1395_s12  ;;  %p1399_p4 = scmp.lt.u32.totalorder %s1395_s12, %s1724_s7 }
 0x7cc   :  { %p1401_p5 = pnand %p1399_p4, %p1396_p3 }
 0x7ce   :  { %1404 = shalt.err (!%p1401_p5)
}
 0x7cf   :  { %1017 = dma.vmem_to_hbm [thread:$0]  %s1012_s8, 256, %s1724_s7, [#allocation4], %s1415_s13, %s1415_s13, %s1416_s14  }
 0x7d0   :  { %1411 = dma.done.wait [#allocation4], 256  }
 0x7d1   :  { %1412 = vsyncadd [#allocation4], 4294967040 }
 0x7d2   :  { %1021 = vsyncpa [#allocation3], 1 }
 0x7d3   :  { %1022 = vsyncpa [#allocation6], 1 }
 0x7d4   :  { %1023 = vsyncpa [#allocation9], 1 }
 0x7d5   :  { %1024 = vsyncpa [#allocation4], 1 }

</bundles_post_ra>
